<compile_context>
chip_gen: v5e
topology: v5e:2x2
jax: 0.10.0
libtpu: 0.0.40
codegen_flags: <defaults>
</compile_context>

<pallas_src>
import functools

import jax
import jax.numpy as jnp
from jax import lax
from jax.experimental import pallas as pl
from jax.experimental.pallas import tpu as pltpu


def _round_up(x, m):
    return ((x + m - 1) // m) * m


def _stable_softplus(x):
    # log(1 + exp(x)) computed stably (matches torch.nn.Softplus, beta=1).
    return jnp.maximum(x, 0.0) + jnp.log1p(jnp.exp(-jnp.abs(x)))


def fused_head_kernel(feat_ref, wbuf_ref, out_ref, *, dp, hp, p, n_h):
    """One batch tile, all horizons, both heads.

    wbuf layout (rows x lanes), all offsets multiples of (8, 128):
      rows [0, dp)        : layer-1 weights  [w1_pred (cols 0..HHd) | w1_unc (cols hp..hp+HHd)]
      rows [dp, dp+hp)    : [w2 block-diag (cols 0..hp) | w3_pred routing (cols hp..hp+p)]
      rows [dp+hp, dp+2hp): [w3_unc routing (cols 0..p)]
      row  dp+2hp         : b1 (both heads, cols 0..2hp)
      row  dp+2hp+1       : [b2 (cols 0..hp) | b3 pred+unc (cols hp..hp+p)]
    """
    two_hp = 2 * hp
    r1 = dp
    r2 = r1 + hp
    r3 = r2 + hp

    feat = feat_ref[...]                                         # (tb, dp)

    # ---- layer 1: one MXU push covers all horizons of BOTH heads ----
    w1 = wbuf_ref[0:dp, 0:two_hp]                                 # (dp, 2*hp)
    b1 = wbuf_ref[r3:r3 + 1, 0:two_hp]                            # (1, 2*hp)
    x1 = jnp.maximum(
        jnp.dot(feat, w1, preferred_element_type=jnp.float32) + b1, 0.0)

    x1_pred = x1[:, 0:hp]                                         # (tb, hp) aligned slice
    x1_unc = x1[:, hp:two_hp]                                     # (tb, hp) aligned slice

    # ---- layer 2 (prediction head only): block-diagonal over horizons ----
    w2 = wbuf_ref[r1:r2, 0:hp]                                    # (hp, hp)
    b2 = wbuf_ref[r3 + 1:r3 + 2, 0:hp]                            # (1, hp)
    x2 = jnp.maximum(
        jnp.dot(x1_pred, w2, preferred_element_type=jnp.float32) + b2, 0.0)

    # ---- layer 3: two accumulating matmuls into the lane-dense output slab ----
    #   cols [0, H)   -> predictions, cols [H, 2H) -> pre-softplus uncertainties
    w3p = wbuf_ref[r1:r2, hp:hp + p]                              # (hp, p)
    w3u = wbuf_ref[r2:r3, 0:p]                                    # (hp, p)
    b3 = wbuf_ref[r3 + 1:r3 + 2, hp:hp + p]                       # (1, p)
    z = (jnp.dot(x2, w3p, preferred_element_type=jnp.float32)
         + jnp.dot(x1_unc, w3u, preferred_element_type=jnp.float32)
         + b3)

    col = lax.broadcasted_iota(jnp.int32, z.shape, 1)
    is_unc = (col >= n_h) & (col < 2 * n_h)
    out_ref[...] = jnp.where(is_unc, _stable_softplus(z), z).astype(out_ref.dtype)


def _pack_params(params, weight_dtype=jnp.float32):
    """One-time wrapper-side layout plumbing: fold horizons + both heads into a
    single lane/sublane-aligned weight buffer."""
    H, D, Hd = params["w1"].shape
    HHd = H * Hd
    hp = _round_up(HHd, 128)                  # padded head-segment width (lane aligned)
    p = max(128, _round_up(2 * H, 128))       # lane-dense output slab width
    dp = _round_up(D, 8)                      # sublane-aligned feature depth
    wb = max(2 * hp, hp + p)
    rows = dp + 2 * hp + 8
    r1, r2, r3 = dp, dp + hp, dp + 2 * hp

    wbuf = jnp.zeros((rows, wb), jnp.float32)

    # layer 1 weights, horizons folded onto the lane axis (pred | unc segments)
    wbuf = wbuf.at[:D, :HHd].set(params["w1"].transpose(1, 0, 2).reshape(D, HHd))
    wbuf = wbuf.at[:D, hp:hp + HHd].set(params["u1"].transpose(1, 0, 2).reshape(D, HHd))

    # layer 2 (pred head): block-diagonal over horizons; layer-3 pred routing block
    wbuf = wbuf.at[r1:r1 + HHd, :HHd].set(
        jax.scipy.linalg.block_diag(*[params["w2"][h] for h in range(H)]))
    wbuf = wbuf.at[r1:r1 + HHd, hp:hp + H].set(
        jax.scipy.linalg.block_diag(*[params["w3"][h] for h in range(H)]))

    # uncertainty output projection -> output columns [H, 2H)
    wbuf = wbuf.at[r2:r2 + HHd, H:2 * H].set(
        jax.scipy.linalg.block_diag(*[params["u2"][h] for h in range(H)]))

    # bias rows (kept out of the matmuls -> exact adds)
    wbuf = wbuf.at[r3, :HHd].set(params["b1"].reshape(HHd))
    wbuf = wbuf.at[r3, hp:hp + HHd].set(params["ub1"].reshape(HHd))
    wbuf = wbuf.at[r3 + 1, :HHd].set(params["b2"].reshape(HHd))
    wbuf = wbuf.at[r3 + 1, hp:hp + H].set(params["b3"].reshape(H))
    wbuf = wbuf.at[r3 + 1, hp + H:hp + 2 * H].set(params["ub2"].reshape(H))

    wbuf = wbuf.astype(weight_dtype)
    meta = {"H": H, "D": D, "Hd": Hd, "dp": dp, "hp": hp, "p": p}
    return wbuf, meta


def make_return_prediction_head(params, *, weight_dtype=jnp.float32, max_batch_tile=512):
    """Pack weights ONCE and return a jitted `apply(features) -> (preds, uncs)`.

    `weight_dtype=jnp.bfloat16` halves weight DMA bytes / MXU passes on v6e/v7x
    (re-validate tolerances); default f32 for exact parity with the module.
    """
    wbuf, meta = _pack_params(params, weight_dtype)
    H, D = meta["H"], meta["D"]
    dp, hp, p = meta["dp"], meta["hp"], meta["p"]
    wrows, wcols = wbuf.shape

    kernel = functools.partial(fused_head_kernel, dp=dp, hp=hp, p=p, n_h=H)
    cp_cls = getattr(pltpu, "CompilerParams", None) or getattr(pltpu, "TPUCompilerParams")

    @jax.jit
    def apply(features):
        B = features.shape[0]
        feat = features.astype(weight_dtype)
        if dp > D:
            feat = jnp.pad(feat, ((0, 0), (0, dp - D)))

        # Batch tile: multiple of 8, capped so double-buffered tiles + weights fit
        # comfortably in v7x's 64 MiB VMEM (<= ~1.5 MiB here).
        tb = min(max_batch_tile, _round_up(B, 8))
        b_pad = _round_up(B, tb)
        if b_pad > B:
            feat = jnp.pad(feat, ((0, b_pad - B), (0, 0)))

        # Blocked specs default to VMEM on TPU; weights use a constant index_map
        # so they are DMA'd once and stay resident across the batch grid.
        out = pl.pallas_call(
            kernel,
            grid=(b_pad // tb,),
            in_specs=[
                pl.BlockSpec((tb, dp), lambda i: (i, 0)),
                pl.BlockSpec((wrows, wcols), lambda i: (0, 0)),
            ],
            out_specs=pl.BlockSpec((tb, p), lambda i: (i, 0)),
            out_shape=jax.ShapeDtypeStruct((b_pad, p), jnp.float32),
            compiler_params=cp_cls(dimension_semantics=("parallel",)),
        )(feat, wbuf)

        preds = out[:B, :H].T          # (H, B)
        uncs = out[:B, H:2 * H].T      # (H, B)
        return preds, uncs

    return apply


def make_params(key, horizons, d_model, hidden_dim):
    H = len(horizons)
    ks = jax.random.split(key, 10)
    scale = 0.05
    return {
        "w1":  scale * jax.random.normal(ks[0], (H, d_model, hidden_dim), jnp.float32),
        "b1":  scale * jax.random.normal(ks[1], (H, 1, hidden_dim), jnp.float32),
        "w2":  scale * jax.random.normal(ks[2], (H, hidden_dim, hidden_dim), jnp.float32),
        "b2":  scale * jax.random.normal(ks[3], (H, 1, hidden_dim), jnp.float32),
        "w3":  scale * jax.random.normal(ks[4], (H, hidden_dim, 1), jnp.float32),
        "b3":  scale * jax.random.normal(ks[5], (H, 1, 1), jnp.float32),
        "u1":  scale * jax.random.normal(ks[6], (H, d_model, hidden_dim), jnp.float32),
        "ub1": scale * jax.random.normal(ks[7], (H, 1, hidden_dim), jnp.float32),
        "u2":  scale * jax.random.normal(ks[8], (H, hidden_dim, 1), jnp.float32),
        "ub2": scale * jax.random.normal(ks[9], (H, 1, 1), jnp.float32),
    }


def reference(features, params):
    """Pure-JAX reference mirroring the PyTorch forward (eval mode)."""
    def mlp(feat, w1, b1, w2, b2, w3, b3):
        x = jnp.maximum(feat @ w1 + b1, 0.0)
        x = jnp.maximum(x @ w2 + b2, 0.0)
        return x @ w3 + b3
    H = params["w1"].shape[0]
    preds, uncs = [], []
    for h in range(H):
        pr = mlp(features, params["w1"][h], params["b1"][h], params["w2"][h],
                 params["b2"][h], params["w3"][h], params["b3"][h])[:, 0]
        u = jnp.maximum(features @ params["u1"][h] + params["ub1"][h], 0.0)
        u = u @ params["u2"][h] + params["ub2"][h]
        preds.append(pr)
        uncs.append(jax.nn.softplus(u)[:, 0])
    return jnp.stack(preds, 0), jnp.stack(uncs, 0)


if __name__ == "__main__":
    horizons = [30, 180, 365, 730]
    batch, d_model, hidden_dim = 8, 32, 32

    key = jax.random.PRNGKey(0)
    k_feat, k_params = jax.random.split(key)
    features = jax.random.normal(k_feat, (batch, d_model), jnp.float32)
    params = make_params(k_params, horizons, d_model, hidden_dim)

    # Pack weights once; `apply` is the jitted per-call path (kernel only).
    apply_head = make_return_prediction_head(params)

    preds, uncs = apply_head(features)
    preds = jax.block_until_ready(preds)
    uncs = jax.block_until_ready(uncs)

    # Same output structure as the PyTorch module.
    out = {
        "predictions":   {f"horizon_{h}": preds[i] for i, h in enumerate(horizons)},
        "uncertainties": {f"horizon_{h}": uncs[i] for i, h in enumerate(horizons)},
    }

    # Correctness check against pure-JAX reference (tolerances allow for MXU
    # default-precision differences between the fused and unfused matmul order).
    ref_p, ref_u = reference(features, params)
    assert jnp.allclose(preds, ref_p, rtol=5e-3, atol=5e-4), "prediction mismatch"
    assert jnp.allclose(uncs, ref_u, rtol=5e-3, atol=5e-4), "uncertainty mismatch"

    print("KERNEL_OK")
</pallas_src>

<mosaic_0001>
module attributes {stable_mosaic.version = 11 : i64} {
  func.func @fused_head_kernel(%arg0: i32, %arg1: memref<8x32xf32, #tpu.memory_space<vmem>>, %arg2: memref<296x256xf32, #tpu.memory_space<vmem>>, %arg3: memref<8x128xf32, #tpu.memory_space<vmem>>) attributes {dimension_semantics = [#tpu.dimension_semantics<parallel>], iteration_bounds = array<i64: 1>, scalar_prefetch = 0 : i64, scratch_operands = 0 : i64, tpu.core_type = #tpu.core_type<tc>, window_params = [{transform_indices = @transform_0, window_bounds = array<i64: 8, 32>}, {pipeline_mode = #tpu.pipeline_mode<synchronous>, transform_indices = @transform_1, window_bounds = array<i64: 296, 256>}, {transform_indices = @transform_2, window_bounds = array<i64: 8, 128>}]} {
    %c0 = arith.constant 0 : index
    %c0_0 = arith.constant 0 : index
    %0 = vector.load %arg1[%c0, %c0_0] : memref<8x32xf32, #tpu.memory_space<vmem>>, vector<8x32xf32>
    %c0_1 = arith.constant 0 : index
    %c0_2 = arith.constant 0 : index
    %1 = vector.load %arg2[%c0_1, %c0_2] : memref<296x256xf32, #tpu.memory_space<vmem>>, vector<32x256xf32>
    %c288 = arith.constant 288 : index
    %c0_3 = arith.constant 0 : index
    %2 = vector.load %arg2[%c288, %c0_3] : memref<296x256xf32, #tpu.memory_space<vmem>>, vector<1x256xf32>
    %cst = arith.constant dense<0.000000e+00> : vector<8x256xf32>
    %3 = tpu.matmul %0, %1, %cst {dimension_numbers = #tpu.dot_dimension_numbers<[1], [0], [0], [1], [0, 0, 1, 1], [], []>} : vector<8x32xf32>, vector<32x256xf32>, vector<8x256xf32> -> vector<8x256xf32>
    %4 = vector.broadcast %2 : vector<1x256xf32> to vector<8x256xf32>
    %5 = arith.addf %3, %4 : vector<8x256xf32>
    %cst_4 = arith.constant 0.000000e+00 : f32
    %6 = vector.broadcast %cst_4 : f32 to vector<8x256xf32>
    %7 = arith.maximumf %5, %6 : vector<8x256xf32>
    %8 = vector.extract_strided_slice %7 {offsets = [0, 0], sizes = [8, 128], strides = [1, 1]} : vector<8x256xf32> to vector<8x128xf32>
    %9 = vector.extract_strided_slice %7 {offsets = [0, 128], sizes = [8, 128], strides = [1, 1]} : vector<8x256xf32> to vector<8x128xf32>
    %c32 = arith.constant 32 : index
    %c0_5 = arith.constant 0 : index
    %10 = vector.load %arg2[%c32, %c0_5] : memref<296x256xf32, #tpu.memory_space<vmem>>, vector<128x128xf32>
    %c289 = arith.constant 289 : index
    %c0_6 = arith.constant 0 : index
    %11 = vector.load %arg2[%c289, %c0_6] : memref<296x256xf32, #tpu.memory_space<vmem>>, vector<1x128xf32>
    %cst_7 = arith.constant dense<0.000000e+00> : vector<8x128xf32>
    %12 = tpu.matmul %8, %10, %cst_7 {dimension_numbers = #tpu.dot_dimension_numbers<[1], [0], [0], [1], [0, 0, 1, 1], [], []>} : vector<8x128xf32>, vector<128x128xf32>, vector<8x128xf32> -> vector<8x128xf32>
    %13 = vector.broadcast %11 : vector<1x128xf32> to vector<8x128xf32>
    %14 = arith.addf %12, %13 : vector<8x128xf32>
    %cst_8 = arith.constant 0.000000e+00 : f32
    %15 = vector.broadcast %cst_8 : f32 to vector<8x128xf32>
    %16 = arith.maximumf %14, %15 : vector<8x128xf32>
    %c32_9 = arith.constant 32 : index
    %c128 = arith.constant 128 : index
    %17 = vector.load %arg2[%c32_9, %c128] : memref<296x256xf32, #tpu.memory_space<vmem>>, vector<128x128xf32>
    %c160 = arith.constant 160 : index
    %c0_10 = arith.constant 0 : index
    %18 = vector.load %arg2[%c160, %c0_10] : memref<296x256xf32, #tpu.memory_space<vmem>>, vector<128x128xf32>
    %c289_11 = arith.constant 289 : index
    %c128_12 = arith.constant 128 : index
    %19 = vector.load %arg2[%c289_11, %c128_12] : memref<296x256xf32, #tpu.memory_space<vmem>>, vector<1x128xf32>
    %cst_13 = arith.constant dense<0.000000e+00> : vector<8x128xf32>
    %20 = tpu.matmul %16, %17, %cst_13 {dimension_numbers = #tpu.dot_dimension_numbers<[1], [0], [0], [1], [0, 0, 1, 1], [], []>} : vector<8x128xf32>, vector<128x128xf32>, vector<8x128xf32> -> vector<8x128xf32>
    %cst_14 = arith.constant dense<0.000000e+00> : vector<8x128xf32>
    %21 = tpu.matmul %9, %18, %cst_14 {dimension_numbers = #tpu.dot_dimension_numbers<[1], [0], [0], [1], [0, 0, 1, 1], [], []>} : vector<8x128xf32>, vector<128x128xf32>, vector<8x128xf32> -> vector<8x128xf32>
    %22 = arith.addf %20, %21 : vector<8x128xf32>
    %23 = vector.broadcast %19 : vector<1x128xf32> to vector<8x128xf32>
    %24 = arith.addf %22, %23 : vector<8x128xf32>
    %25 = tpu.iota {dimensions = array<i32: 1>} : vector<8x128xi32>
    %c4_i32 = arith.constant 4 : i32
    %26 = vector.broadcast %c4_i32 : i32 to vector<8x128xi32>
    %27 = arith.cmpi sge, %25, %26 : vector<8x128xi32>
    %c8_i32 = arith.constant 8 : i32
    %28 = vector.broadcast %c8_i32 : i32 to vector<8x128xi32>
    %29 = arith.cmpi slt, %25, %28 : vector<8x128xi32>
    %30 = arith.andi %27, %29 : vector<8x128xi1>
    %cst_15 = arith.constant 0.000000e+00 : f32
    %31 = vector.broadcast %cst_15 : f32 to vector<8x128xf32>
    %32 = arith.maximumf %24, %31 : vector<8x128xf32>
    %33 = math.absf %24 : vector<8x128xf32>
    %cst_16 = arith.constant 0.000000e+00 : f32
    %34 = vector.broadcast %cst_16 : f32 to vector<8x128xf32>
    %35 = arith.subf %34, %33 : vector<8x128xf32>
    %36 = math.exp %35 : vector<8x128xf32>
    %37 = math.log1p %36 : vector<8x128xf32>
    %38 = arith.addf %32, %37 : vector<8x128xf32>
    %39 = arith.select %30, %38, %24 : vector<8x128xi1>, vector<8x128xf32>
    %c0_17 = arith.constant 0 : index
    %c0_18 = arith.constant 0 : index
    %40 = vector.load %arg3[%c0_17, %c0_18] : memref<8x128xf32, #tpu.memory_space<vmem>>, vector<8x128xf32>
    tpu.vector_store %arg3[%c0_17, %c0_18], %39 {strides = array<i32>} : memref<8x128xf32, #tpu.memory_space<vmem>>, vector<8x128xf32>,
    return
  }
  func.func @transform_0(%arg0: i32) -> (i32, i32) {
    %c0_i32 = arith.constant 0 : i32
    %c0_i32_0 = arith.constant 0 : i32
    return %arg0, %c0_i32 : i32, i32
  }
  func.func @transform_1(%arg0: i32) -> (i32, i32) {
    %c0_i32 = arith.constant 0 : i32
    %c0_i32_0 = arith.constant 0 : i32
    %c0_i32_1 = arith.constant 0 : i32
    return %c0_i32, %c0_i32_0 : i32, i32
  }
  func.func @transform_2(%arg0: i32) -> (i32, i32) {
    %c0_i32 = arith.constant 0 : i32
    %c0_i32_0 = arith.constant 0 : i32
    return %arg0, %c0_i32 : i32, i32
  }
}

</mosaic_0001>

<bundles_post_ra>
// kernel: apply.1
= control target key start
LH: loop header
LB: loop body
LE: loop exit
PB: predicated region body
PF: predicated region fallthrough
CT: control target
= control target key end

     0   :  { %7 = vsyncpa [#allocation3], 0  ;;  %s335_s0 = inlined_call_operand.hbm [shape: f32[8,32], index: 0, kind: input, shape index: {}]   ;;  %s336_s1 = inlined_call_operand.hbm [shape: f32[296,256], index: 1, kind: input, shape index: {}]   ;;  %s337_s2 = inlined_call_operand.vmem [shape: f32[8,128], index: 2, kind: output, shape index: {}]  }
   0x1   :  { %s14_s11 = sshll.u32 %s335_s0, 4  ;;  %s15_s11 = int_to_ptr.hbm [resolvable:$true] %s14_s11 }
   0x2   :  { %8 = vsyncpa [#allocation5], 0  ;;  %s305_s12 = smov [#allocation2]   ;;  %s24_s16 = sshll.u32 %s336_s1, 4  ;;  %s25_s16 = int_to_ptr.hbm [resolvable:$true] %s24_s16 }
   0x3   :  { %s16_s13 = sshll.u32 %s305_s12, 4  ;;  %s306_s17 = smov [#allocation4]   ;;  %s17_s13 = int_to_ptr.vmem [resolvable:$true] %s16_s13 }
   0x4   :  { %19 = dma.hbm_to_vmem [thread:$0]  %s15_s11, 128, %s17_s13, [#allocation3]  }
   0x5   :  { %s26_s18 = sshll.u32 %s306_s17, 4  ;;  %s307_s19 = smov 256   ;;  %s27_s18 = int_to_ptr.vmem [resolvable:$true] %s26_s18 }
   0x6   :  { %s308_s20 = smov 16  }
   0x7   :  { %32 = dma.hbm_to_vmem [thread:$0]  %s25_s16, 9472, %s27_s18, [#allocation5], %s307_s19, %s307_s19, %s308_s20  }
   0x8   :  { %301 = dma.done.wait [#allocation3], 128  }
   0x9   :  { %302 = vsyncadd [#allocation3], 4294967168 }
   0xa   :  { %303 = dma.done.wait [#allocation5], 9472  }
   0xb   :  { %304 = vsyncadd [#allocation5], 4294957824  ;;  %v48_v0 = vld [vmem:[#allocation4 + $0x30] sm:$0xff]  ;;  %v46_v1 = vld [vmem:[#allocation4 + $0x20] sm:$0xff]  ;;  %vm57_vm0 = vcmask 261120  }
   0xc   :  { %73 = vmatpush.msra.mxu1 %v48_v0  ;;  %v118_v2 = vld [vmem:[#allocation4 + $0x130] sm:$0xff]  ;;  %v117_v4 = vld [vmem:[#allocation4 + $0x120] sm:$0xff]  ;;  %v41_v7 = vld [vmem:[#allocation2] sm:$0xff] }
   0xd   :  { %v44_v3 = vld [vmem:[#allocation4 + $0x10] sm:$0xff]  ;;  %120 = vmatpush.msra.mxu2 %v118_v2  ;;  %v42_v6 = vld [vmem:[#allocation4] sm:$0xff]  ;;  %v49_v9 = vld [vmem:[#allocation4 + $0x38] sm:$0xff] }
   0xe   :  { %74 = vmatpush.msra.mxu1 %v46_v1  ;;  %v116_v5 = vld [vmem:[#allocation4 + $0x110] sm:$0xff]  ;;  %v115_v8 = vld [vmem:[#allocation4 + $0x100] sm:$0xff]  ;;  %v47_v11 = vld [vmem:[#allocation4 + $0x28] sm:$0xff] }
   0xf   :  { %121 = vmatpush.msra.mxu2 %v117_v4  ;;  %v114_v10 = vld [vmem:[#allocation4 + $0xf0] sm:$0xff]  ;;  %v113_v12 = vld [vmem:[#allocation4 + $0xe0] sm:$0xff]  ;;  %v45_v21 = vld [vmem:[#allocation4 + $0x18] sm:$0xff] }
  0x10   :  { %75 = vmatpush.msra.mxu1 %v44_v3  ;;  %v112_v13 = vld [vmem:[#allocation4 + $0xd0] sm:$0xff]  ;;  %v111_v14 = vld [vmem:[#allocation4 + $0xc0] sm:$0xff]  ;;  %v43_v23 = vld [vmem:[#allocation4 + $0x8] sm:$0xff] }
  0x11   :  { %122 = vmatpush.msra.mxu2 %v116_v5  ;;  %v110_v15 = vld [vmem:[#allocation4 + $0xb0] sm:$0xff]  ;;  %v109_v16 = vld [vmem:[#allocation4 + $0xa0] sm:$0xff]  ;;  %v156_v27 = vld [vmem:[#allocation4 + $0x138] sm:$0xff] }
  0x12   :  { %76 = vmatpush.msra.mxu1 %v42_v6  ;;  %v108_v17 = vld [vmem:[#allocation4 + $0x90] sm:$0xff]  ;;  %v107_v18 = vld [vmem:[#allocation4 + $0x80] sm:$0xff]  ;;  %194 = vmatpush.msra.mxu0 %v156_v27  ;;  %v155_v29 = vld [vmem:[#allocation4 + $0x128] sm:$0xff] }
  0x13   :  { %243 = vmatmul.msk.f32.vlgmr.msra.gmra.mxu1 %vm57_vm0, %v41_v7  ;;  %123 = vmatpush.msra.mxu2 %v115_v8  ;;  %v106_v19 = vld [vmem:[#allocation4 + $0x70] sm:$0xff]  ;;  %v105_v20 = vld [vmem:[#allocation4 + $0x60] sm:$0xff]  ;;  %v154_v30 = vld [vmem:[#allocation4 + $0x118] sm:$0xff] }
  0x14   :  { %93 = vmatpush.msrb.mxu1 %v49_v9  ;;  %v104_v22 = vld [vmem:[#allocation4 + $0x50] sm:$0xff]  ;;  %v103_v24 = vld [vmem:[#allocation4 + $0x40] sm:$0xff]  ;;  %195 = vmatpush.msra.mxu0 %v155_v29  ;;  %v153_v32 = vld [vmem:[#allocation4 + $0x108] sm:$0xff] }
  0x15   :  { %124 = vmatpush.msra.mxu2 %v114_v10  ;;  %v172_v25 = vld [vmem:[#allocation4 + $0x230] sm:$0xff]  ;;  %v171_v26 = vld [vmem:[#allocation4 + $0x220] sm:$0xff]  ;;  %v152_v34 = vld [vmem:[#allocation4 + $0xf8] sm:$0xff] }
  0x16   :  { %94 = vmatpush.msrb.mxu1 %v47_v11  ;;  %174 = vmatpush.msra.mxu3 %v172_v25  ;;  %v170_v28 = vld [vmem:[#allocation4 + $0x210] sm:$0xff]  ;;  %v169_v31 = vld [vmem:[#allocation4 + $0x200] sm:$0xff]  ;;  %v151_v36 = vld [vmem:[#allocation4 + $0xe8] sm:$0xff] }
  0x17   :  { %125 = vmatpush.msra.mxu2 %v113_v12  ;;  %v168_v33 = vld [vmem:[#allocation4 + $0x1f0] sm:$0xff]  ;;  %196 = vmatpush.msra.mxu0 %v154_v30  ;;  %v167_v35 = vld [vmem:[#allocation4 + $0x1e0] sm:$0xff]  ;;  %v150_v38 = vld [vmem:[#allocation4 + $0xd8] sm:$0xff] }
  0x18   :  { %95 = vmatpush.msrb.mxu1 %v45_v21  ;;  %175 = vmatpush.msra.mxu3 %v171_v26  ;;  %v166_v37 = vld [vmem:[#allocation4 + $0x1d0] sm:$0xff]  ;;  %v165_v39 = vld [vmem:[#allocation4 + $0x1c0] sm:$0xff]  ;;  %v149_v40 = vld [vmem:[#allocation4 + $0xc8] sm:$0xff] }
  0x19   :  { %126 = vmatpush.msra.mxu2 %v112_v13  ;;  %197 = vmatpush.msra.mxu0 %v153_v32  ;;  %v164_v41 = vld [vmem:[#allocation4 + $0x1b0] sm:$0xff]  ;;  %v148_v42 = vld [vmem:[#allocation4 + $0xb8] sm:$0xff]  ;;  %v163_v43 = vld [vmem:[#allocation4 + $0x1a0] sm:$0xff] }
  0x1a   :  { %96 = vmatpush.msrb.mxu1 %v43_v23  ;;  %176 = vmatpush.msra.mxu3 %v170_v28  ;;  %v147_v44 = vld [vmem:[#allocation4 + $0xa8] sm:$0xff]  ;;  %v162_v45 = vld [vmem:[#allocation4 + $0x190] sm:$0xff]  ;;  %v161_v46 = vld [vmem:[#allocation4 + $0x180] sm:$0xff] }
  0x1b   :  { %127 = vmatpush.msra.mxu2 %v111_v14  ;;  %244 = vmatmul.msk.f32.vlgmr.msrb.gmra.mxu1 %vm57_vm0, %v41_v7  ;;  %v51_v47 = vld [vmem:[#allocation4 + $0x240] ss:$8 sm:$0x3]  ;;  %v160_v48 = vld [vmem:[#allocation4 + $0x170] sm:$0xff]  ;;  %v146_v54 = vld [vmem:[#allocation4 + $0x98] sm:$0xff] }
  0x1c   :  { %177 = vmatpush.msra.mxu3 %v169_v31  ;;  %198 = vmatpush.msra.mxu0 %v152_v34  ;;  %v53_v49 = vperm.slane %v51_v47, 0  ;;  %v159_v53 = vld [vmem:[#allocation4 + $0x160] sm:$0xff]  ;;  %v158_v55 = vld [vmem:[#allocation4 + $0x150] sm:$0xff]  ;;  %v145_v56 = vld [vmem:[#allocation4 + $0x88] sm:$0xff]  ;;  %v54_v59 = vperm.slane %v51_v47, 1 }
  0x1d   :  { %128 = vmatpush.msra.mxu2 %v110_v15  ;;  %v157_v57 = vld [vmem:[#allocation4 + $0x140] sm:$0xff]  ;;  %v144_v58 = vld [vmem:[#allocation4 + $0x78] sm:$0xff]  ;;  %v143_v63 = vld [vmem:[#allocation4 + $0x68] sm:$0xff]  ;;  %v215_v15 = vlaneseq }
  0x1e   :  { %178 = vmatpush.msra.mxu3 %v168_v33  ;;  %199 = vmatpush.msra.mxu0 %v151_v36  ;;  %v142_v0 = vld [vmem:[#allocation4 + $0x58] sm:$0xff]  ;;  %v141_v1 = vld [vmem:[#allocation4 + $0x48] sm:$0xff]  ;;  %v119_v2 = vld [vmem:[#allocation4 + $0x241] ss:$0 sm:$0xff] }
  0x1f   :  { %129 = vmatpush.msra.mxu2 %v109_v16  ;;  %v173_v7 = vld [vmem:[#allocation4 + $0x249] ss:$0 sm:$0xff] }
  0x20   :  { %179 = vmatpush.msra.mxu3 %v167_v35  ;;  %200 = vmatpush.msra.mxu0 %v150_v38 }
  0x21   :  { %130 = vmatpush.msra.mxu2 %v108_v17 }
  0x22   :  { %180 = vmatpush.msra.mxu3 %v166_v37  ;;  %201 = vmatpush.msra.mxu0 %v149_v40 }
  0x23   :  { %131 = vmatpush.msra.mxu2 %v107_v18  ;;  %v216_v18 = vand.u32 127, %v215_v15 }
  0x24   :  { %181 = vmatpush.msra.mxu3 %v165_v39  ;;  %202 = vmatpush.msra.mxu0 %v148_v42 }
  0x25   :  { %132 = vmatpush.msra.mxu2 %v106_v19  ;;  %vm217_vm1 = vcmp.ge.s32.totalorder %v216_v18, 4  ;;  %vm218_vm2 = vcmp.lt.s32.totalorder %v216_v18, 8 }
  0x26   :  { %182 = vmatpush.msra.mxu3 %v164_v41  ;;  %203 = vmatpush.msra.mxu0 %v147_v44  ;;  %vm219_vm4 = vmand %vm217_vm1, %vm218_vm2 }
  0x27   :  { %133 = vmatpush.msra.mxu2 %v105_v20 }
  0x28   :  { %183 = vmatpush.msra.mxu3 %v163_v43  ;;  %204 = vmatpush.msra.mxu0 %v146_v54 }
  0x29   :  { %134 = vmatpush.msra.mxu2 %v104_v22 }
  0x2a   :  { %184 = vmatpush.msra.mxu3 %v162_v45  ;;  %205 = vmatpush.msra.mxu0 %v145_v56 }
  0x2b   :  { %135 = vmatpush.msra.mxu2 %v103_v24 }
  0x2c   :  { %185 = vmatpush.msra.mxu3 %v161_v46  ;;  %206 = vmatpush.msra.mxu0 %v144_v58 }
  0x2e   :  { %186 = vmatpush.msra.mxu3 %v160_v48  ;;  %207 = vmatpush.msra.mxu0 %v143_v63 }
  0x30   :  { %187 = vmatpush.msra.mxu3 %v159_v53  ;;  %208 = vmatpush.msra.mxu0 %v142_v0 }
  0x32   :  { %188 = vmatpush.msra.mxu3 %v158_v55  ;;  %209 = vmatpush.msra.mxu0 %v141_v1 }
  0x34   :  { %189 = vmatpush.msra.mxu3 %v157_v57 }
  0x90   :  { %v78_v50 = vpop.f32.mrf.mxu1 }
  0x91   :  { %v79_v51 = vadd.f32 %v78_v50, %v53_v49 }
  0x93   :  { %v101_v52 = vmax.f32 %v79_v51, 0.0 }
  0x95   :  { %136 = vmatmul.f32.vlgmr.msra.gmra.mxu2 %v101_v52 }
  0x98   :  { %v98_v60 = vpop.f32.mrf.mxu1 }
  0x99   :  { %v99_v61 = vadd.f32 %v98_v60, %v54_v59 }
  0x9b   :  { %v102_v62 = vmax.f32 %v99_v61, 0.0 }
  0x9d   :  { %190 = vmatmul.f32.vlgmr.msra.gmra.mxu3 %v102_v62 }
 0x118   :  { %v137_v3 = vpop.f32.mrf.mxu2 }
 0x119   :  { %v138_v4 = vadd.f32 %v137_v3, %v119_v2 }
 0x11b   :  { %v140_v5 = vmax.f32 %v138_v4, 0.0 }
 0x11d   :  { %210 = vmatmul.f32.vlgmr.msra.gmra.mxu0 %v140_v5 }
 0x120   :  { %v191_v6 = vpop.f32.mrf.mxu3 }
 0x19a   :  { %v211_v8 = vpop.f32.mrf.mxu0 }
 0x19b   :  { %v212_v9 = vadd.f32 %v211_v8, %v191_v6 }
 0x19d   :  { %v214_v10 = vadd.f32 %v212_v9, %v173_v7 }
 0x19f   :  { %v221_v11 = vand.u32 2147483647, %v214_v10  ;;  %v220_v24 = vmax.f32 %v214_v10, 0.0 }
 0x1a1   :  { %v222_v12 = vsub.f32 0.0, %v221_v11 }
 0x1a3   :  { %v223_v13 = vmul.f32 1.442695, %v222_v12 }
 0x1a5   :  { %249 = vpow2.f32 %v223_v13 }
 0x1ab   :  { %v250_v14 = vpop.eup %249 }
 0x1ac   :  { %v225_v16 = vadd.f32 1.0, %v250_v14  ;;  %v228_v17 = vmul.f32 -0.5, %v250_v14  ;;  %v231_v20 = vand.u32 2147483647, %v250_v14 }
 0x1ae   :  { %251 = vlog2.f32 %v225_v16  ;;  %v229_v19 = vadd.f32 1.0, %v228_v17  ;;  %vm232_vm3 = vcmp.lt.f32.partialorder %v231_v20, 0.0004427343 }
 0x1b0   :  { %v230_v23 = vmul.f32 %v250_v14, %v229_v19 }
 0x1b4   :  { %v252_v21 = vpop.eup %251 }
 0x1b5   :  { %v227_v22 = vmul.f32 0.6931472, %v252_v21 }
 0x1b7   :  { %v233_v25 = vsel %vm232_vm3, %v230_v23, %v227_v22 }
 0x1b8   :  { %v234_v26 = vadd.f32 %v233_v25, %v220_v24 }
 0x1ba   :  { %v235_v27 = vsel %vm219_vm4, %v234_v26, %v214_v10 }
 0x1bb   :  { %236 = vst [vmem:[%s337_s2] sm:$0xff] %v235_v27 }
 0x1bc   :  { %241 = vsyncpa [#allocation3], 1 }
 0x1bd   :  { %242 = vsyncpa [#allocation5], 1 }

</bundles_post_ra>
